<compile_context>
chip_gen: v5e
topology: v5e:2x2
jax: 0.10.0
libtpu: 0.0.40
codegen_flags: <defaults>
</compile_context>

<pallas_src>
import functools

import jax
import jax.numpy as jnp
from jax.experimental import pallas as pl
from jax.experimental.pallas import tpu as pltpu

LANE = 128  # TPU lane width; all feature dims padded to a multiple of this


def _round_up(n, m):
    return ((n + m - 1) // m) * m


# ----------------------------- Pallas kernel -------------------------------
def _mlp_kernel(*refs, num_hidden: int, apply_softmax: bool):
    """Fused MLP forward for one batch tile.

    refs = (x, [w_i, shift_i] * num_hidden, w_out, b_out, class_mask, out)

    Hidden layer i:  h = relu(x @ (W_i * bn_scale_i) + shift_i)
      (Linear bias + eval-mode BatchNorm1d folded exactly; Dropout in eval
       mode is identity.)  Padded feature lanes have zero weight columns and
      shift = 0, so they stay exactly 0 through ReLU and contribute nothing
      to later matmuls.

    Output layer:    o = h @ Wo + bo   (optional softmax over real classes;
    padded logit lanes get a -1e30 additive mask first).
    """
    x_ref = refs[0]
    out_ref = refs[-1]
    mask_ref = refs[-2]
    bo_ref = refs[-3]
    wo_ref = refs[-4]

    h = x_ref[...]  # bf16 [tile_b, in_p], already lane-dense
    for i in range(num_hidden):
        w_ref = refs[1 + 2 * i]
        sh_ref = refs[2 + 2 * i]
        h = jnp.dot(h.astype(jnp.bfloat16), w_ref[...],
                    preferred_element_type=jnp.float32)
        h = jnp.maximum(h + sh_ref[...], 0.0)

    o = jnp.dot(h.astype(jnp.bfloat16), wo_ref[...],
                preferred_element_type=jnp.float32) + bo_ref[...]

    if apply_softmax:
        o = o + mask_ref[...]                       # padded classes -> -1e30
        m = jnp.max(o, axis=-1, keepdims=True)
        e = jnp.exp(o - m)
        o = e * (1.0 / jnp.sum(e, axis=-1, keepdims=True))  # exact normalize

    out_ref[...] = o.astype(out_ref.dtype)


# ------------------------------ Wrapper ------------------------------------
def mlp_forward(x, params, apply_softmax=False, tile_b_max=512,
                out_dtype=jnp.float32):
    """x: [B, input_size] float32 (or bf16). Returns [B, num_classes]."""
    B, f_in = x.shape
    num_classes = params["num_classes"]
    num_hidden = params["num_hidden"]
    in_p = params["w1"].shape[0]         # padded input width (multiple of 128)
    nclass_p = params["wo"].shape[1]     # padded output width (multiple of 128)

    # ---- Batch tiling ------------------------------------------------------
    # Pick tile_b so batch padding is at most ~7 rows (not up to tile_b-1),
    # and force >= 2 grid steps when B allows so both v7x TensorCores get work
    # via the "parallel" grid axis.
    n_tiles = max(1, -(-B // tile_b_max))
    if B >= 16:
        n_tiles = max(n_tiles, 2)
    tile_b = _round_up(-(-B // n_tiles), 8)
    b_pad = _round_up(B, tile_b)
    grid = (b_pad // tile_b,)

    # ---- Activation stream: bf16, pad fused with the cast -------------------
    xb = x.astype(jnp.bfloat16)
    if b_pad != B or in_p != f_in:
        xb = jnp.pad(xb, ((0, b_pad - B), (0, in_p - f_in)))

    weight_names = []
    for i in range(1, num_hidden + 1):
        weight_names += [f"w{i}", f"sh{i}"]
    weight_names += ["wo", "bo", "cls_mask"]
    weights = [params[n] for n in weight_names]
    operands = (xb, *weights)

    resident_bytes = sum(int(a.size) * a.dtype.itemsize for a in weights)
    # TODO(synk): if resident weights ever exceed ~40 MiB (v7x has 64 MiB/TC,
    # 32 MiB default scoped), switch to a K/N-tiled grid instead of holding
    # all weights VMEM-resident.

    def build(buffered: bool):
        def resident_spec(a):
            kwargs = {}
            if buffered:
                # Constant index_map -> never re-fetched; single buffer halves
                # the resident VMEM footprint (matters on v7x's 64 MiB/TC).
                kwargs["pipeline_mode"] = pl.Buffered(1)
            return pl.BlockSpec(a.shape, lambda i: (0, 0), **kwargs)

        in_specs = [pl.BlockSpec((tile_b, in_p), lambda i: (i, 0))]
        in_specs += [resident_spec(a) for a in weights]

        weight_bufs = 1 if buffered else 2
        stream_bytes = (2 * tile_b * in_p * 2
                        + 2 * tile_b * nclass_p * jnp.dtype(out_dtype).itemsize)
        vmem_limit = int(min(max(weight_bufs * resident_bytes + stream_bytes
                                 + (8 << 20), 32 << 20), 100 << 20))

        return pl.pallas_call(
            functools.partial(_mlp_kernel,
                              num_hidden=num_hidden,
                              apply_softmax=apply_softmax),
            grid=grid,
            in_specs=in_specs,
            out_specs=pl.BlockSpec((tile_b, nclass_p), lambda i: (i, 0)),
            out_shape=jax.ShapeDtypeStruct((b_pad, nclass_p), out_dtype),
            compiler_params=pltpu.CompilerParams(
                dimension_semantics=("parallel",),
                vmem_limit_bytes=vmem_limit),
        )(*operands)

    try:
        out = build(buffered=True)
    except Exception:
        # Fallback for jax versions that reject pipeline_mode=pl.Buffered(1)
        # on a resident BlockSpec: default double-buffering (still correct).
        out = build(buffered=False)

    return out[:B, :num_classes]


# --------------------------- Parameter setup --------------------------------
def init_params(key, input_size, hidden_sizes, num_classes, eps=1e-5):
    """Deterministic synthetic parameters matching the PyTorch module's shapes.

    Linear(in, out):   W [out, in], b [out]
    BatchNorm1d(out):  gamma, beta, running_mean, running_var  (all [out])

    Eval-mode BN scale is folded into the weight columns (in f32, before the
    bf16 cast); Linear bias + BN shift are folded into a per-feature shift.
    W is pre-transposed to [in, out] and every feature dim is zero-padded to
    a multiple of 128 lanes (numerically exact: padded columns/shift are 0 so
    padded hidden features stay at relu(0) = 0, padded rows contribute 0).
    """
    num_hidden = len(hidden_sizes)
    dims = [input_size] + list(hidden_sizes)
    params = {"num_classes": num_classes, "num_hidden": num_hidden}
    keys = jax.random.split(key, 4 * num_hidden + 2)
    ki = 0
    for i, (din, dout) in enumerate(zip(dims[:-1], dims[1:]), start=1):
        bound = 1.0 / jnp.sqrt(din)
        W = jax.random.uniform(keys[ki], (dout, din), jnp.float32, -bound, bound); ki += 1
        b = jax.random.uniform(keys[ki], (dout,), jnp.float32, -bound, bound);     ki += 1
        gamma = 1.0 + 0.1 * jax.random.normal(keys[ki], (dout,), jnp.float32);     ki += 1
        stats = jax.random.normal(keys[ki], (3, dout), jnp.float32);               ki += 1
        beta = 0.1 * stats[0]
        running_mean = 0.1 * stats[1]
        running_var = 1.0 + 0.1 * jnp.abs(stats[2])

        scale = gamma / jnp.sqrt(running_var + eps)
        shift = (b - running_mean) * scale + beta

        din_p, dout_p = _round_up(din, LANE), _round_up(dout, LANE)
        w_scaled = W.T * scale[None, :]                  # fold BN scale (f32)
        w_pad = jnp.zeros((din_p, dout_p), jnp.float32).at[:din, :dout].set(w_scaled)
        params[f"w{i}"] = w_pad.astype(jnp.bfloat16)                     # [in_p, out_p]
        params[f"sh{i}"] = jnp.zeros((1, dout_p), jnp.float32).at[0, :dout].set(shift)

    din, dout = hidden_sizes[-1], num_classes
    bound = 1.0 / jnp.sqrt(din)
    Wo = jax.random.uniform(keys[ki], (dout, din), jnp.float32, -bound, bound); ki += 1
    bo = jax.random.uniform(keys[ki], (dout,), jnp.float32, -bound, bound);     ki += 1
    din_p, dout_p = _round_up(din, LANE), _round_up(dout, LANE)
    wo_pad = jnp.zeros((din_p, dout_p), jnp.float32).at[:din, :dout].set(Wo.T)
    params["wo"] = wo_pad.astype(jnp.bfloat16)                           # [hid_p, nclass_p]
    params["bo"] = jnp.zeros((1, dout_p), jnp.float32).at[0, :dout].set(bo)

    # Resident additive softmax mask: 0 on real classes, -1e30 on padded lanes.
    params["cls_mask"] = jnp.full((1, dout_p), -1e30, jnp.float32).at[0, :num_classes].set(0.0)
    return params


# Pure-JAX reference with identical padded / bf16-matmul math.
def mlp_reference(x, params, apply_softmax=False):
    num_classes = params["num_classes"]
    num_hidden = params["num_hidden"]
    in_p = params["w1"].shape[0]
    f_in = x.shape[1]
    h = jnp.pad(x.astype(jnp.bfloat16), ((0, 0), (0, in_p - f_in)))
    for i in range(1, num_hidden + 1):
        h = jnp.dot(h.astype(jnp.bfloat16), params[f"w{i}"],
                    preferred_element_type=jnp.float32)
        h = jnp.maximum(h + params[f"sh{i}"], 0.0)
    o = jnp.dot(h.astype(jnp.bfloat16), params["wo"],
                preferred_element_type=jnp.float32) + params["bo"]
    o = o[:, :num_classes]
    if apply_softmax:
        o = jax.nn.softmax(o, axis=1)
    return o


if __name__ == "__main__":
    # Small shapes consistent with the module: MLPModel(input_size=32,
    # hidden_sizes=[64, 32], num_classes=10), batch=8.
    input_size, hidden_sizes, num_classes, batch = 32, [64, 32], 10, 8

    key = jax.random.PRNGKey(0)
    kx, kp = jax.random.split(key)
    x = jax.random.normal(kx, (batch, input_size), jnp.float32)
    params = init_params(kp, input_size, hidden_sizes, num_classes)

    # Logits (apply_softmax=False)
    out = jax.block_until_ready(mlp_forward(x, params, apply_softmax=False))
    ref = mlp_reference(x, params, apply_softmax=False)
    assert out.shape == (batch, num_classes)
    assert jnp.allclose(out, ref, atol=2e-3, rtol=2e-3)

    # Probabilities (apply_softmax=True); exact normalization in-kernel.
    out_sm = jax.block_until_ready(mlp_forward(x, params, apply_softmax=True))
    ref_sm = mlp_reference(x, params, apply_softmax=True)
    assert jnp.allclose(out_sm, ref_sm, atol=2e-3, rtol=2e-3)
    assert jnp.allclose(jnp.sum(out_sm, axis=1), 1.0, atol=1e-4)

    # Larger, non-multiple batch: exercises the multi-step "parallel" grid
    # (>=2 steps so both v7x TCs get work) with <= 7 rows of batch padding.
    xb = jax.random.normal(kx, (300, input_size), jnp.float32)
    out_b = jax.block_until_ready(
        mlp_forward(xb, params, apply_softmax=True, tile_b_max=512))
    ref_b = mlp_reference(xb, params, apply_softmax=True)
    assert out_b.shape == (300, num_classes)
    assert jnp.allclose(out_b, ref_b, atol=2e-3, rtol=2e-3)

    print("KERNEL_OK")
</pallas_src>

<mosaic_0001>
module attributes {stable_mosaic.version = 11 : i64} {
  func.func @_mlp_kernel(%arg0: i32, %arg1: memref<8x128xbf16, #tpu.memory_space<vmem>>, %arg2: memref<128x128xbf16, #tpu.memory_space<vmem>>, %arg3: memref<1x128xf32, #tpu.memory_space<vmem>>, %arg4: memref<128x128xbf16, #tpu.memory_space<vmem>>, %arg5: memref<1x128xf32, #tpu.memory_space<vmem>>, %arg6: memref<128x128xbf16, #tpu.memory_space<vmem>>, %arg7: memref<1x128xf32, #tpu.memory_space<vmem>>, %arg8: memref<1x128xf32, #tpu.memory_space<vmem>>, %arg9: memref<8x128xf32, #tpu.memory_space<vmem>>) attributes {dimension_semantics = [#tpu.dimension_semantics<parallel>], iteration_bounds = array<i64: 1>, scalar_prefetch = 0 : i64, scratch_operands = 0 : i64, tpu.core_type = #tpu.core_type<tc>, window_params = [{transform_indices = @transform_0, window_bounds = array<i64: 8, 128>}, {pipeline_mode = #tpu.pipeline_mode<synchronous>, transform_indices = @transform_1, window_bounds = array<i64: 128, 128>}, {pipeline_mode = #tpu.pipeline_mode<synchronous>, transform_indices = @transform_2, window_bounds = array<i64: 1, 128>}, {pipeline_mode = #tpu.pipeline_mode<synchronous>, transform_indices = @transform_3, window_bounds = array<i64: 128, 128>}, {pipeline_mode = #tpu.pipeline_mode<synchronous>, transform_indices = @transform_4, window_bounds = array<i64: 1, 128>}, {pipeline_mode = #tpu.pipeline_mode<synchronous>, transform_indices = @transform_5, window_bounds = array<i64: 128, 128>}, {pipeline_mode = #tpu.pipeline_mode<synchronous>, transform_indices = @transform_6, window_bounds = array<i64: 1, 128>}, {pipeline_mode = #tpu.pipeline_mode<synchronous>, transform_indices = @transform_7, window_bounds = array<i64: 1, 128>}, {transform_indices = @transform_8, window_bounds = array<i64: 8, 128>}]} {
    %c0 = arith.constant 0 : index
    %c0_0 = arith.constant 0 : index
    %0 = vector.load %arg1[%c0, %c0_0] : memref<8x128xbf16, #tpu.memory_space<vmem>>, vector<8x128xbf16>
    %c0_1 = arith.constant 0 : index
    %c0_2 = arith.constant 0 : index
    %1 = vector.load %arg2[%c0_1, %c0_2] : memref<128x128xbf16, #tpu.memory_space<vmem>>, vector<128x128xbf16>
    %cst = arith.constant dense<0.000000e+00> : vector<8x128xf32>
    %2 = tpu.matmul %0, %1, %cst {dimension_numbers = #tpu.dot_dimension_numbers<[1], [0], [0], [1], [0, 0, 1, 1], [], []>} : vector<8x128xbf16>, vector<128x128xbf16>, vector<8x128xf32> -> vector<8x128xf32>
    %c0_3 = arith.constant 0 : index
    %c0_4 = arith.constant 0 : index
    %3 = vector.load %arg3[%c0_3, %c0_4] : memref<1x128xf32, #tpu.memory_space<vmem>>, vector<1x128xf32>
    %4 = vector.broadcast %3 : vector<1x128xf32> to vector<8x128xf32>
    %5 = arith.addf %2, %4 : vector<8x128xf32>
    %cst_5 = arith.constant 0.000000e+00 : f32
    %6 = vector.broadcast %cst_5 : f32 to vector<8x128xf32>
    %7 = arith.maximumf %5, %6 : vector<8x128xf32>
    %8 = arith.truncf %7 : vector<8x128xf32> to vector<8x128xbf16>
    %c0_6 = arith.constant 0 : index
    %c0_7 = arith.constant 0 : index
    %9 = vector.load %arg4[%c0_6, %c0_7] : memref<128x128xbf16, #tpu.memory_space<vmem>>, vector<128x128xbf16>
    %cst_8 = arith.constant dense<0.000000e+00> : vector<8x128xf32>
    %10 = tpu.matmul %8, %9, %cst_8 {dimension_numbers = #tpu.dot_dimension_numbers<[1], [0], [0], [1], [0, 0, 1, 1], [], []>} : vector<8x128xbf16>, vector<128x128xbf16>, vector<8x128xf32> -> vector<8x128xf32>
    %c0_9 = arith.constant 0 : index
    %c0_10 = arith.constant 0 : index
    %11 = vector.load %arg5[%c0_9, %c0_10] : memref<1x128xf32, #tpu.memory_space<vmem>>, vector<1x128xf32>
    %12 = vector.broadcast %11 : vector<1x128xf32> to vector<8x128xf32>
    %13 = arith.addf %10, %12 : vector<8x128xf32>
    %cst_11 = arith.constant 0.000000e+00 : f32
    %14 = vector.broadcast %cst_11 : f32 to vector<8x128xf32>
    %15 = arith.maximumf %13, %14 : vector<8x128xf32>
    %16 = arith.truncf %15 : vector<8x128xf32> to vector<8x128xbf16>
    %c0_12 = arith.constant 0 : index
    %c0_13 = arith.constant 0 : index
    %17 = vector.load %arg6[%c0_12, %c0_13] : memref<128x128xbf16, #tpu.memory_space<vmem>>, vector<128x128xbf16>
    %cst_14 = arith.constant dense<0.000000e+00> : vector<8x128xf32>
    %18 = tpu.matmul %16, %17, %cst_14 {dimension_numbers = #tpu.dot_dimension_numbers<[1], [0], [0], [1], [0, 0, 1, 1], [], []>} : vector<8x128xbf16>, vector<128x128xbf16>, vector<8x128xf32> -> vector<8x128xf32>
    %c0_15 = arith.constant 0 : index
    %c0_16 = arith.constant 0 : index
    %19 = vector.load %arg7[%c0_15, %c0_16] : memref<1x128xf32, #tpu.memory_space<vmem>>, vector<1x128xf32>
    %20 = vector.broadcast %19 : vector<1x128xf32> to vector<8x128xf32>
    %21 = arith.addf %18, %20 : vector<8x128xf32>
    %c0_17 = arith.constant 0 : index
    %c0_18 = arith.constant 0 : index
    %22 = vector.load %arg9[%c0_17, %c0_18] : memref<8x128xf32, #tpu.memory_space<vmem>>, vector<8x128xf32>
    tpu.vector_store %arg9[%c0_17, %c0_18], %21 {strides = array<i32>} : memref<8x128xf32, #tpu.memory_space<vmem>>, vector<8x128xf32>,
    return
  }
  func.func @transform_0(%arg0: i32) -> (i32, i32) {
    %c0_i32 = arith.constant 0 : i32
    %c0_i32_0 = arith.constant 0 : i32
    return %arg0, %c0_i32 : i32, i32
  }
  func.func @transform_1(%arg0: i32) -> (i32, i32) {
    %c0_i32 = arith.constant 0 : i32
    %c0_i32_0 = arith.constant 0 : i32
    %c0_i32_1 = arith.constant 0 : i32
    return %c0_i32, %c0_i32_0 : i32, i32
  }
  func.func @transform_2(%arg0: i32) -> (i32, i32) {
    %c0_i32 = arith.constant 0 : i32
    %c0_i32_0 = arith.constant 0 : i32
    %c0_i32_1 = arith.constant 0 : i32
    return %c0_i32, %c0_i32_0 : i32, i32
  }
  func.func @transform_3(%arg0: i32) -> (i32, i32) {
    %c0_i32 = arith.constant 0 : i32
    %c0_i32_0 = arith.constant 0 : i32
    %c0_i32_1 = arith.constant 0 : i32
    return %c0_i32, %c0_i32_0 : i32, i32
  }
  func.func @transform_4(%arg0: i32) -> (i32, i32) {
    %c0_i32 = arith.constant 0 : i32
    %c0_i32_0 = arith.constant 0 : i32
    %c0_i32_1 = arith.constant 0 : i32
    return %c0_i32, %c0_i32_0 : i32, i32
  }
  func.func @transform_5(%arg0: i32) -> (i32, i32) {
    %c0_i32 = arith.constant 0 : i32
    %c0_i32_0 = arith.constant 0 : i32
    %c0_i32_1 = arith.constant 0 : i32
    return %c0_i32, %c0_i32_0 : i32, i32
  }
  func.func @transform_6(%arg0: i32) -> (i32, i32) {
    %c0_i32 = arith.constant 0 : i32
    %c0_i32_0 = arith.constant 0 : i32
    %c0_i32_1 = arith.constant 0 : i32
    return %c0_i32, %c0_i32_0 : i32, i32
  }
  func.func @transform_7(%arg0: i32) -> (i32, i32) {
    %c0_i32 = arith.constant 0 : i32
    %c0_i32_0 = arith.constant 0 : i32
    %c0_i32_1 = arith.constant 0 : i32
    return %c0_i32, %c0_i32_0 : i32, i32
  }
  func.func @transform_8(%arg0: i32) -> (i32, i32) {
    %c0_i32 = arith.constant 0 : i32
    %c0_i32_0 = arith.constant 0 : i32
    return %arg0, %c0_i32 : i32, i32
  }
}

module attributes {stable_mosaic.version = 11 : i64} {
  func.func @_mlp_kernel(%arg0: i32, %arg1: memref<8x128xbf16, #tpu.memory_space<vmem>>, %arg2: memref<128x128xbf16, #tpu.memory_space<vmem>>, %arg3: memref<1x128xf32, #tpu.memory_space<vmem>>, %arg4: memref<128x128xbf16, #tpu.memory_space<vmem>>, %arg5: memref<1x128xf32, #tpu.memory_space<vmem>>, %arg6: memref<128x128xbf16, #tpu.memory_space<vmem>>, %arg7: memref<1x128xf32, #tpu.memory_space<vmem>>, %arg8: memref<1x128xf32, #tpu.memory_space<vmem>>, %arg9: memref<8x128xf32, #tpu.memory_space<vmem>>) attributes {dimension_semantics = [#tpu.dimension_semantics<parallel>], iteration_bounds = array<i64: 1>, scalar_prefetch = 0 : i64, scratch_operands = 0 : i64, tpu.core_type = #tpu.core_type<tc>, window_params = [{transform_indices = @transform_0, window_bounds = array<i64: 8, 128>}, {pipeline_mode = #tpu.pipeline_mode<synchronous>, transform_indices = @transform_1, window_bounds = array<i64: 128, 128>}, {pipeline_mode = #tpu.pipeline_mode<synchronous>, transform_indices = @transform_2, window_bounds = array<i64: 1, 128>}, {pipeline_mode = #tpu.pipeline_mode<synchronous>, transform_indices = @transform_3, window_bounds = array<i64: 128, 128>}, {pipeline_mode = #tpu.pipeline_mode<synchronous>, transform_indices = @transform_4, window_bounds = array<i64: 1, 128>}, {pipeline_mode = #tpu.pipeline_mode<synchronous>, transform_indices = @transform_5, window_bounds = array<i64: 128, 128>}, {pipeline_mode = #tpu.pipeline_mode<synchronous>, transform_indices = @transform_6, window_bounds = array<i64: 1, 128>}, {pipeline_mode = #tpu.pipeline_mode<synchronous>, transform_indices = @transform_7, window_bounds = array<i64: 1, 128>}, {transform_indices = @transform_8, window_bounds = array<i64: 8, 128>}]} {
    %c0 = arith.constant 0 : index
    %c0_0 = arith.constant 0 : index
    %0 = vector.load %arg1[%c0, %c0_0] : memref<8x128xbf16, #tpu.memory_space<vmem>>, vector<8x128xbf16>
    %c0_1 = arith.constant 0 : index
    %c0_2 = arith.constant 0 : index
    %1 = vector.load %arg2[%c0_1, %c0_2] : memref<128x128xbf16, #tpu.memory_space<vmem>>, vector<128x128xbf16>
    %cst = arith.constant dense<0.000000e+00> : vector<8x128xf32>
    %2 = tpu.matmul %0, %1, %cst {dimension_numbers = #tpu.dot_dimension_numbers<[1], [0], [0], [1], [0, 0, 1, 1], [], []>} : vector<8x128xbf16>, vector<128x128xbf16>, vector<8x128xf32> -> vector<8x128xf32>
    %c0_3 = arith.constant 0 : index
    %c0_4 = arith.constant 0 : index
    %3 = vector.load %arg3[%c0_3, %c0_4] : memref<1x128xf32, #tpu.memory_space<vmem>>, vector<1x128xf32>
    %4 = vector.broadcast %3 : vector<1x128xf32> to vector<8x128xf32>
    %5 = arith.addf %2, %4 : vector<8x128xf32>
    %cst_5 = arith.constant 0.000000e+00 : f32
    %6 = vector.broadcast %cst_5 : f32 to vector<8x128xf32>
    %7 = arith.maximumf %5, %6 : vector<8x128xf32>
    %8 = arith.truncf %7 : vector<8x128xf32> to vector<8x128xbf16>
    %c0_6 = arith.constant 0 : index
    %c0_7 = arith.constant 0 : index
    %9 = vector.load %arg4[%c0_6, %c0_7] : memref<128x128xbf16, #tpu.memory_space<vmem>>, vector<128x128xbf16>
    %cst_8 = arith.constant dense<0.000000e+00> : vector<8x128xf32>
    %10 = tpu.matmul %8, %9, %cst_8 {dimension_numbers = #tpu.dot_dimension_numbers<[1], [0], [0], [1], [0, 0, 1, 1], [], []>} : vector<8x128xbf16>, vector<128x128xbf16>, vector<8x128xf32> -> vector<8x128xf32>
    %c0_9 = arith.constant 0 : index
    %c0_10 = arith.constant 0 : index
    %11 = vector.load %arg5[%c0_9, %c0_10] : memref<1x128xf32, #tpu.memory_space<vmem>>, vector<1x128xf32>
    %12 = vector.broadcast %11 : vector<1x128xf32> to vector<8x128xf32>
    %13 = arith.addf %10, %12 : vector<8x128xf32>
    %cst_11 = arith.constant 0.000000e+00 : f32
    %14 = vector.broadcast %cst_11 : f32 to vector<8x128xf32>
    %15 = arith.maximumf %13, %14 : vector<8x128xf32>
    %16 = arith.truncf %15 : vector<8x128xf32> to vector<8x128xbf16>
    %c0_12 = arith.constant 0 : index
    %c0_13 = arith.constant 0 : index
    %17 = vector.load %arg6[%c0_12, %c0_13] : memref<128x128xbf16, #tpu.memory_space<vmem>>, vector<128x128xbf16>
    %cst_14 = arith.constant dense<0.000000e+00> : vector<8x128xf32>
    %18 = tpu.matmul %16, %17, %cst_14 {dimension_numbers = #tpu.dot_dimension_numbers<[1], [0], [0], [1], [0, 0, 1, 1], [], []>} : vector<8x128xbf16>, vector<128x128xbf16>, vector<8x128xf32> -> vector<8x128xf32>
    %c0_15 = arith.constant 0 : index
    %c0_16 = arith.constant 0 : index
    %19 = vector.load %arg7[%c0_15, %c0_16] : memref<1x128xf32, #tpu.memory_space<vmem>>, vector<1x128xf32>
    %20 = vector.broadcast %19 : vector<1x128xf32> to vector<8x128xf32>
    %21 = arith.addf %18, %20 : vector<8x128xf32>
    %c0_17 = arith.constant 0 : index
    %c0_18 = arith.constant 0 : index
    %22 = vector.load %arg9[%c0_17, %c0_18] : memref<8x128xf32, #tpu.memory_space<vmem>>, vector<8x128xf32>
    tpu.vector_store %arg9[%c0_17, %c0_18], %21 {strides = array<i32>} : memref<8x128xf32, #tpu.memory_space<vmem>>, vector<8x128xf32>,
    return
  }
  func.func @transform_0(%arg0: i32) -> (i32, i32) {
    %c0_i32 = arith.constant 0 : i32
    %c0_i32_0 = arith.constant 0 : i32
    return %arg0, %c0_i32 : i32, i32
  }
  func.func @transform_1(%arg0: i32) -> (i32, i32) {
    %c0_i32 = arith.constant 0 : i32
    %c0_i32_0 = arith.constant 0 : i32
    %c0_i32_1 = arith.constant 0 : i32
    return %c0_i32, %c0_i32_0 : i32, i32
  }
  func.func @transform_2(%arg0: i32) -> (i32, i32) {
    %c0_i32 = arith.constant 0 : i32
    %c0_i32_0 = arith.constant 0 : i32
    %c0_i32_1 = arith.constant 0 : i32
    return %c0_i32, %c0_i32_0 : i32, i32
  }
  func.func @transform_3(%arg0: i32) -> (i32, i32) {
    %c0_i32 = arith.constant 0 : i32
    %c0_i32_0 = arith.constant 0 : i32
    %c0_i32_1 = arith.constant 0 : i32
    return %c0_i32, %c0_i32_0 : i32, i32
  }
  func.func @transform_4(%arg0: i32) -> (i32, i32) {
    %c0_i32 = arith.constant 0 : i32
    %c0_i32_0 = arith.constant 0 : i32
    %c0_i32_1 = arith.constant 0 : i32
    return %c0_i32, %c0_i32_0 : i32, i32
  }
  func.func @transform_5(%arg0: i32) -> (i32, i32) {
    %c0_i32 = arith.constant 0 : i32
    %c0_i32_0 = arith.constant 0 : i32
    %c0_i32_1 = arith.constant 0 : i32
    return %c0_i32, %c0_i32_0 : i32, i32
  }
  func.func @transform_6(%arg0: i32) -> (i32, i32) {
    %c0_i32 = arith.constant 0 : i32
    %c0_i32_0 = arith.constant 0 : i32
    %c0_i32_1 = arith.constant 0 : i32
    return %c0_i32, %c0_i32_0 : i32, i32
  }
  func.func @transform_7(%arg0: i32) -> (i32, i32) {
    %c0_i32 = arith.constant 0 : i32
    %c0_i32_0 = arith.constant 0 : i32
    %c0_i32_1 = arith.constant 0 : i32
    return %c0_i32, %c0_i32_0 : i32, i32
  }
  func.func @transform_8(%arg0: i32) -> (i32, i32) {
    %c0_i32 = arith.constant 0 : i32
    %c0_i32_0 = arith.constant 0 : i32
    return %arg0, %c0_i32 : i32, i32
  }
}

</mosaic_0001>

<bundles_post_ra>
// kernel: tpu_custom_call.1
= control target key start
LH: loop header
LB: loop body
LE: loop exit
PB: predicated region body
PF: predicated region fallthrough
CT: control target
= control target key end

     0   :  { %13 = vsyncpa [#allocation3], 0  ;;  %s693_s0 = inlined_call_operand.hbm [shape: bf16[8,128], index: 0, kind: input, shape index: {}]   ;;  %s694_s1 = inlined_call_operand.hbm [shape: bf16[128,128], index: 1, kind: input, shape index: {}]   ;;  %s695_s2 = inlined_call_operand.vmem [shape: f32[1,128], index: 2, kind: input, shape index: {}]   ;;  %s696_s3 = inlined_call_operand.hbm [shape: bf16[128,128], index: 3, kind: input, shape index: {}]   ;;  %s697_s4 = inlined_call_operand.vmem [shape: f32[1,128], index: 4, kind: input, shape index: {}]   ;;  %s698_s5 = inlined_call_operand.hbm [shape: bf16[128,128], index: 5, kind: input, shape index: {}]   ;;  %s699_s6 = inlined_call_operand.vmem [shape: f32[1,128], index: 6, kind: input, shape index: {}]   ;;  %s700_s7 = inlined_call_operand.vmem [shape: f32[1,128], index: 7, kind: input, shape index: {}]   ;;  %s701_s8 = inlined_call_operand.hbm [shape: f32[8,128], index: 8, kind: output, shape index: {}]  }
   0x1   :  { %14 = vsyncpa [#allocation6], 0 }
   0x2   :  { %15 = vsyncpa [#allocation9], 0  ;;  %s32_s29 = sshll.u32 %s694_s1, 4  ;;  %s33_s29 = int_to_ptr.hbm [resolvable:$true] %s32_s29 }
   0x3   :  { %16 = vsyncpa [#allocation4], 0  ;;  %s617_s30 = smov [#allocation5]   ;;  %s22_s12 = sshll.u32 %s693_s0, 4  ;;  %s23_s12 = int_to_ptr.hbm [resolvable:$true] %s22_s12 }
   0x4   :  { %s34_s9 = sshll.u32 %s617_s30, 4  ;;  %s618_s7 = smov 64   ;;  %s35_s9 = int_to_ptr.vmem [resolvable:$true] %s34_s9 }
   0x5   :  { %s619_s13 = smov 4   ;;  %s620_s14 = smov [#allocation2]  }
   0x6   :  { %40 = dma.hbm_to_vmem [thread:$0]  %s33_s29, 1024, %s35_s9, [#allocation6], %s618_s7, %s618_s7, %s619_s13  }
   0x7   :  { %s24_s15 = sshll.u32 %s620_s14, 4  ;;  %s47_s18 = sshll.u32 %s696_s3, 4  ;;  %s25_s15 = int_to_ptr.vmem [resolvable:$true] %s24_s15  ;;  %s48_s18 = int_to_ptr.hbm [resolvable:$true] %s47_s18 }
   0x8   :  { %27 = dma.hbm_to_vmem [thread:$0]  %s23_s12, 64, %s25_s15, [#allocation3]  }
   0x9   :  { %s62_s20 = sshll.u32 %s698_s5, 4  ;;  %s621_s21 = smov [#allocation7]   ;;  %s63_s20 = int_to_ptr.hbm [resolvable:$true] %s62_s20 }
   0xa   :  { %s49_s22 = sshll.u32 %s621_s21, 4  ;;  %s622_s0 = smov [#allocation8]   ;;  %s50_s22 = int_to_ptr.vmem [resolvable:$true] %s49_s22 }
   0xb   :  { %55 = dma.hbm_to_vmem [thread:$0]  %s48_s18, 1024, %s50_s22, [#allocation6], %s618_s7, %s618_s7, %s619_s13  }
   0xc   :  { %s64_s23 = sshll.u32 %s622_s0, 4  ;;  %s65_s23 = int_to_ptr.vmem [resolvable:$true] %s64_s23 }
   0xd   :  { %70 = dma.hbm_to_vmem [thread:$0]  %s63_s20, 1024, %s65_s23, [#allocation9], %s618_s7, %s618_s7, %s619_s13  }
   0xe   :  { %609 = dma.done.wait [#allocation3], 64  }
   0xf   :  { %610 = vsyncadd [#allocation3], 4294967232 }
  0x10   :  { %611 = dma.done.wait [#allocation6], 2048  }
  0x11   :  { %612 = vsyncadd [#allocation6], 4294965248 }
  0x12   :  { %613 = dma.done.wait [#allocation9], 1024  }
  0x13   :  { %614 = vsyncadd [#allocation9], 4294966272  ;;  %v462_v0 = vld [vmem:[#allocation5 + $0x38] sm:$0xff]  ;;  %v461_v1 = vld [vmem:[#allocation5 + $0x30] sm:$0xff]  ;;  %s623_s27 = smov [#allocation10]   ;;  %s347_s9 = sshll.u32 %s701_s8, 4  ;;  %s348_s9 = int_to_ptr.hbm [resolvable:$true] %s347_s9 }
  0x14   :  { %160 = vmatpush.bf16.msra.mxu0 %v462_v0  ;;  %v470_v2 = vld [vmem:[#allocation7 + $0x38] sm:$0xff]  ;;  %v469_v3 = vld [vmem:[#allocation7 + $0x30] sm:$0xff]  ;;  %v460_v4 = vld [vmem:[#allocation5 + $0x28] sm:$0xff]  ;;  %s345_s28 = sshll.u32 %s623_s27, 4  ;;  %s346_s28 = int_to_ptr.vmem [resolvable:$true] %s345_s28 }
  0x15   :  { %243 = vmatpush.bf16.msra.mxu1 %v470_v2  ;;  %v468_v5 = vld [vmem:[#allocation7 + $0x28] sm:$0xff]  ;;  %v459_v6 = vld [vmem:[#allocation5 + $0x20] sm:$0xff]  ;;  %v458_v8 = vld [vmem:[#allocation5 + $0x18] sm:$0xff] }
  0x16   :  { %v467_v7 = vld [vmem:[#allocation7 + $0x20] sm:$0xff]  ;;  %v466_v9 = vld [vmem:[#allocation7 + $0x18] sm:$0xff]  ;;  %v457_v10 = vld [vmem:[#allocation5 + $0x10] sm:$0xff] }
  0x17   :  { %v465_v11 = vld [vmem:[#allocation7 + $0x10] sm:$0xff]  ;;  %v456_v12 = vld [vmem:[#allocation5 + $0x8] sm:$0xff]  ;;  %v455_v13 = vld [vmem:[#allocation5] sm:$0xff] }
  0x18   :  { %161 = vmatpush.bf16.msra.mxu0 %v461_v1  ;;  %v91_v14 = vld [vmem:[#allocation2] sm:$0xf]  ;;  %v464_v15 = vld [vmem:[#allocation7 + $0x8] sm:$0xff]  ;;  %v463_v16 = vld [vmem:[#allocation7] sm:$0xff] }
  0x19   :  { %244 = vmatpush.bf16.msra.mxu1 %v469_v3  ;;  %v478_v17 = vld [vmem:[#allocation8 + $0x38] sm:$0xff]  ;;  %v477_v18 = vld [vmem:[#allocation8 + $0x30] sm:$0xff]  ;;  %v476_v19 = vld [vmem:[#allocation8 + $0x28] sm:$0xff] }
  0x1a   :  { %326 = vmatpush.bf16.msra.mxu2 %v478_v17  ;;  %v475_v20 = vld [vmem:[#allocation8 + $0x20] sm:$0xff]  ;;  %v474_v21 = vld [vmem:[#allocation8 + $0x18] sm:$0xff]  ;;  %v473_v22 = vld [vmem:[#allocation8 + $0x10] sm:$0xff] }
  0x1b   :  { %v486_v23 = vld [vmem:[%s695_s2] ss:$0 sm:$0xff]  ;;  %v472_v29 = vld [vmem:[#allocation8 + $0x8] sm:$0xff]  ;;  %v471_v30 = vld [vmem:[#allocation8] sm:$0xff] }
  0x1c   :  { %162 = vmatpush.bf16.msra.mxu0 %v460_v4  ;;  %v487_v31 = vld [vmem:[%s697_s4] ss:$0 sm:$0xff] }
  0x1d   :  { %245 = vmatpush.bf16.msra.mxu1 %v468_v5  ;;  %v488_v37 = vld [vmem:[%s699_s6] ss:$0 sm:$0xff] }
  0x1e   :  { %327 = vmatpush.bf16.msra.mxu2 %v477_v18 }
  0x20   :  { %163 = vmatpush.bf16.msra.mxu0 %v459_v6 }
  0x21   :  { %246 = vmatpush.bf16.msra.mxu1 %v467_v7 }
  0x22   :  { %328 = vmatpush.bf16.msra.mxu2 %v476_v19 }
  0x24   :  { %164 = vmatpush.bf16.msra.mxu0 %v458_v8 }
  0x25   :  { %247 = vmatpush.bf16.msra.mxu1 %v466_v9 }
  0x26   :  { %329 = vmatpush.bf16.msra.mxu2 %v475_v20 }
  0x28   :  { %165 = vmatpush.bf16.msra.mxu0 %v457_v10 }
  0x29   :  { %248 = vmatpush.bf16.msra.mxu1 %v465_v11 }
  0x2a   :  { %330 = vmatpush.bf16.msra.mxu2 %v474_v21 }
  0x2c   :  { %166 = vmatpush.bf16.msra.mxu0 %v456_v12 }
  0x2d   :  { %249 = vmatpush.bf16.msra.mxu1 %v464_v15 }
  0x2e   :  { %331 = vmatpush.bf16.msra.mxu2 %v473_v22 }
  0x30   :  { %167 = vmatpush.bf16.msra.mxu0 %v455_v13 }
  0x31   :  { %250 = vmatpush.bf16.msra.mxu1 %v463_v16 }
  0x32   :  { %332 = vmatpush.bf16.msra.mxu2 %v472_v29 }
  0x33   :  { %168 = vmatmul.bf16.vlgmr.msra.gmra.mxu0 %v91_v14 }
  0x36   :  { %333 = vmatpush.bf16.msra.mxu2 %v471_v30 }
  0xb0   :  { %v169_v24 = vpop.f32.mrf.mxu0 }
  0xb1   :  { %v170_v25 = vadd.f32 %v486_v23, %v169_v24 }
  0xb3   :  { %v173_v26 = vmax.f32 %v170_v25, 0.0 }
  0xb5   :  { %v174_v27 = vpack.c.bf16 %v173_v26, %v173_v26 }
  0xb7   :  { %251 = vmatmul.bf16.vlgmr.msra.gmra.mxu1 %v174_v27 }
  0xb8   :  { %v171_v28 = vpop.f32.mrf.mxu0 }
 0x134   :  { %v252_v32 = vpop.f32.mrf.mxu1 }
 0x135   :  { %v253_v33 = vadd.f32 %v487_v31, %v252_v32 }
 0x137   :  { %v256_v34 = vmax.f32 %v253_v33, 0.0 }
 0x139   :  { %v257_v35 = vpack.c.bf16 %v256_v34, %v256_v34 }
 0x13b   :  { %334 = vmatmul.bf16.vlgmr.msra.gmra.mxu2 %v257_v35 }
 0x13c   :  { %v254_v36 = vpop.f32.mrf.mxu1 }
 0x1be   :  { %v335_v38 = vpop.f32.mrf.mxu2 }
 0x1bf   :  { %v336_v39 = vadd.f32 %v488_v37, %v335_v38 }
 0x1c1   :  { %339 = vst [vmem:[#allocation10] sm:$0xff] %v336_v39 }
 0x1c2   :  { %350 = dma.vmem_to_hbm [thread:$0]  %s346_s28, 128, %s348_s9, [#allocation4]  }
 0x1c6   :  { %v337_v40 = vpop.f32.mrf.mxu2 }
 0x1c7   :  { %615 = dma.done.wait [#allocation4], 128  }
 0x1c8   :  { %616 = vsyncadd [#allocation4], 4294967168 }
 0x1c9   :  { %355 = vsyncpa [#allocation3], 1 }
 0x1ca   :  { %356 = vsyncpa [#allocation6], 1 }
 0x1cb   :  { %357 = vsyncpa [#allocation9], 1 }
 0x1cc   :  { %358 = vsyncpa [#allocation4], 1 }

// kernel: tpu_custom_call.1
= control target key start
LH: loop header
LB: loop body
LE: loop exit
PB: predicated region body
PF: predicated region fallthrough
CT: control target
= control target key end

     0   :  { %13 = vsyncpa [#allocation3], 0  ;;  %s693_s0 = inlined_call_operand.hbm [shape: bf16[8,128], index: 0, kind: input, shape index: {}]   ;;  %s694_s1 = inlined_call_operand.hbm [shape: bf16[128,128], index: 1, kind: input, shape index: {}]   ;;  %s695_s2 = inlined_call_operand.vmem [shape: f32[1,128], index: 2, kind: input, shape index: {}]   ;;  %s696_s3 = inlined_call_operand.hbm [shape: bf16[128,128], index: 3, kind: input, shape index: {}]   ;;  %s697_s4 = inlined_call_operand.vmem [shape: f32[1,128], index: 4, kind: input, shape index: {}]   ;;  %s698_s5 = inlined_call_operand.hbm [shape: bf16[128,128], index: 5, kind: input, shape index: {}]   ;;  %s699_s6 = inlined_call_operand.vmem [shape: f32[1,128], index: 6, kind: input, shape index: {}]   ;;  %s700_s7 = inlined_call_operand.vmem [shape: f32[1,128], index: 7, kind: input, shape index: {}]   ;;  %s701_s8 = inlined_call_operand.hbm [shape: f32[8,128], index: 8, kind: output, shape index: {}]  }
   0x1   :  { %14 = vsyncpa [#allocation6], 0 }
   0x2   :  { %15 = vsyncpa [#allocation9], 0  ;;  %s32_s29 = sshll.u32 %s694_s1, 4  ;;  %s33_s29 = int_to_ptr.hbm [resolvable:$true] %s32_s29 }
   0x3   :  { %16 = vsyncpa [#allocation4], 0  ;;  %s617_s30 = smov [#allocation5]   ;;  %s22_s12 = sshll.u32 %s693_s0, 4  ;;  %s23_s12 = int_to_ptr.hbm [resolvable:$true] %s22_s12 }
   0x4   :  { %s34_s9 = sshll.u32 %s617_s30, 4  ;;  %s618_s7 = smov 64   ;;  %s35_s9 = int_to_ptr.vmem [resolvable:$true] %s34_s9 }
   0x5   :  { %s619_s13 = smov 4   ;;  %s620_s14 = smov [#allocation2]  }
   0x6   :  { %40 = dma.hbm_to_vmem [thread:$0]  %s33_s29, 1024, %s35_s9, [#allocation6], %s618_s7, %s618_s7, %s619_s13  }
   0x7   :  { %s24_s15 = sshll.u32 %s620_s14, 4  ;;  %s47_s18 = sshll.u32 %s696_s3, 4  ;;  %s25_s15 = int_to_ptr.vmem [resolvable:$true] %s24_s15  ;;  %s48_s18 = int_to_ptr.hbm [resolvable:$true] %s47_s18 }
   0x8   :  { %27 = dma.hbm_to_vmem [thread:$0]  %s23_s12, 64, %s25_s15, [#allocation3]  }
   0x9   :  { %s62_s20 = sshll.u32 %s698_s5, 4  ;;  %s621_s21 = smov [#allocation7]   ;;  %s63_s20 = int_to_ptr.hbm [resolvable:$true] %s62_s20 }
   0xa   :  { %s49_s22 = sshll.u32 %s621_s21, 4  ;;  %s622_s0 = smov [#allocation8]   ;;  %s50_s22 = int_to_ptr.vmem [resolvable:$true] %s49_s22 }
   0xb   :  { %55 = dma.hbm_to_vmem [thread:$0]  %s48_s18, 1024, %s50_s22, [#allocation6], %s618_s7, %s618_s7, %s619_s13  }
   0xc   :  { %s64_s23 = sshll.u32 %s622_s0, 4  ;;  %s65_s23 = int_to_ptr.vmem [resolvable:$true] %s64_s23 }
   0xd   :  { %70 = dma.hbm_to_vmem [thread:$0]  %s63_s20, 1024, %s65_s23, [#allocation9], %s618_s7, %s618_s7, %s619_s13  }
   0xe   :  { %609 = dma.done.wait [#allocation3], 64  }
   0xf   :  { %610 = vsyncadd [#allocation3], 4294967232 }
  0x10   :  { %611 = dma.done.wait [#allocation6], 2048  }
  0x11   :  { %612 = vsyncadd [#allocation6], 4294965248 }
  0x12   :  { %613 = dma.done.wait [#allocation9], 1024  }
  0x13   :  { %614 = vsyncadd [#allocation9], 4294966272  ;;  %v462_v0 = vld [vmem:[#allocation5 + $0x38] sm:$0xff]  ;;  %v461_v1 = vld [vmem:[#allocation5 + $0x30] sm:$0xff]  ;;  %s623_s27 = smov [#allocation10]   ;;  %s347_s9 = sshll.u32 %s701_s8, 4  ;;  %s348_s9 = int_to_ptr.hbm [resolvable:$true] %s347_s9 }
  0x14   :  { %160 = vmatpush.bf16.msra.mxu0 %v462_v0  ;;  %v470_v2 = vld [vmem:[#allocation7 + $0x38] sm:$0xff]  ;;  %v469_v3 = vld [vmem:[#allocation7 + $0x30] sm:$0xff]  ;;  %v460_v4 = vld [vmem:[#allocation5 + $0x28] sm:$0xff]  ;;  %s345_s28 = sshll.u32 %s623_s27, 4  ;;  %s346_s28 = int_to_ptr.vmem [resolvable:$true] %s345_s28 }
  0x15   :  { %243 = vmatpush.bf16.msra.mxu1 %v470_v2  ;;  %v468_v5 = vld [vmem:[#allocation7 + $0x28] sm:$0xff]  ;;  %v459_v6 = vld [vmem:[#allocation5 + $0x20] sm:$0xff]  ;;  %v458_v8 = vld [vmem:[#allocation5 + $0x18] sm:$0xff] }
  0x16   :  { %v467_v7 = vld [vmem:[#allocation7 + $0x20] sm:$0xff]  ;;  %v466_v9 = vld [vmem:[#allocation7 + $0x18] sm:$0xff]  ;;  %v457_v10 = vld [vmem:[#allocation5 + $0x10] sm:$0xff] }
  0x17   :  { %v465_v11 = vld [vmem:[#allocation7 + $0x10] sm:$0xff]  ;;  %v456_v12 = vld [vmem:[#allocation5 + $0x8] sm:$0xff]  ;;  %v455_v13 = vld [vmem:[#allocation5] sm:$0xff] }
  0x18   :  { %161 = vmatpush.bf16.msra.mxu0 %v461_v1  ;;  %v91_v14 = vld [vmem:[#allocation2] sm:$0xf]  ;;  %v464_v15 = vld [vmem:[#allocation7 + $0x8] sm:$0xff]  ;;  %v463_v16 = vld [vmem:[#allocation7] sm:$0xff] }
  0x19   :  { %244 = vmatpush.bf16.msra.mxu1 %v469_v3  ;;  %v478_v17 = vld [vmem:[#allocation8 + $0x38] sm:$0xff]  ;;  %v477_v18 = vld [vmem:[#allocation8 + $0x30] sm:$0xff]  ;;  %v476_v19 = vld [vmem:[#allocation8 + $0x28] sm:$0xff] }
  0x1a   :  { %326 = vmatpush.bf16.msra.mxu2 %v478_v17  ;;  %v475_v20 = vld [vmem:[#allocation8 + $0x20] sm:$0xff]  ;;  %v474_v21 = vld [vmem:[#allocation8 + $0x18] sm:$0xff]  ;;  %v473_v22 = vld [vmem:[#allocation8 + $0x10] sm:$0xff] }
  0x1b   :  { %v486_v23 = vld [vmem:[%s695_s2] ss:$0 sm:$0xff]  ;;  %v472_v29 = vld [vmem:[#allocation8 + $0x8] sm:$0xff]  ;;  %v471_v30 = vld [vmem:[#allocation8] sm:$0xff] }
  0x1c   :  { %162 = vmatpush.bf16.msra.mxu0 %v460_v4  ;;  %v487_v31 = vld [vmem:[%s697_s4] ss:$0 sm:$0xff] }
  0x1d   :  { %245 = vmatpush.bf16.msra.mxu1 %v468_v5  ;;  %v488_v37 = vld [vmem:[%s699_s6] ss:$0 sm:$0xff] }
  0x1e   :  { %327 = vmatpush.bf16.msra.mxu2 %v477_v18 }
  0x20   :  { %163 = vmatpush.bf16.msra.mxu0 %v459_v6 }
  0x21   :  { %246 = vmatpush.bf16.msra.mxu1 %v467_v7 }
  0x22   :  { %328 = vmatpush.bf16.msra.mxu2 %v476_v19 }
  0x24   :  { %164 = vmatpush.bf16.msra.mxu0 %v458_v8 }
  0x25   :  { %247 = vmatpush.bf16.msra.mxu1 %v466_v9 }
  0x26   :  { %329 = vmatpush.bf16.msra.mxu2 %v475_v20 }
  0x28   :  { %165 = vmatpush.bf16.msra.mxu0 %v457_v10 }
  0x29   :  { %248 = vmatpush.bf16.msra.mxu1 %v465_v11 }
  0x2a   :  { %330 = vmatpush.bf16.msra.mxu2 %v474_v21 }
  0x2c   :  { %166 = vmatpush.bf16.msra.mxu0 %v456_v12 }
  0x2d   :  { %249 = vmatpush.bf16.msra.mxu1 %v464_v15 }
  0x2e   :  { %331 = vmatpush.bf16.msra.mxu2 %v473_v22 }
  0x30   :  { %167 = vmatpush.bf16.msra.mxu0 %v455_v13 }
  0x31   :  { %250 = vmatpush.bf16.msra.mxu1 %v463_v16 }
  0x32   :  { %332 = vmatpush.bf16.msra.mxu2 %v472_v29 }
  0x33   :  { %168 = vmatmul.bf16.vlgmr.msra.gmra.mxu0 %v91_v14 }
  0x36   :  { %333 = vmatpush.bf16.msra.mxu2 %v471_v30 }
  0xb0   :  { %v169_v24 = vpop.f32.mrf.mxu0 }
  0xb1   :  { %v170_v25 = vadd.f32 %v486_v23, %v169_v24 }
  0xb3   :  { %v173_v26 = vmax.f32 %v170_v25, 0.0 }
  0xb5   :  { %v174_v27 = vpack.c.bf16 %v173_v26, %v173_v26 }
  0xb7   :  { %251 = vmatmul.bf16.vlgmr.msra.gmra.mxu1 %v174_v27 }
  0xb8   :  { %v171_v28 = vpop.f32.mrf.mxu0 }
 0x134   :  { %v252_v32 = vpop.f32.mrf.mxu1 }
 0x135   :  { %v253_v33 = vadd.f32 %v487_v31, %v252_v32 }
 0x137   :  { %v256_v34 = vmax.f32 %v253_v33, 0.0 }
 0x139   :  { %v257_v35 = vpack.c.bf16 %v256_v34, %v256_v34 }
 0x13b   :  { %334 = vmatmul.bf16.vlgmr.msra.gmra.mxu2 %v257_v35 }
 0x13c   :  { %v254_v36 = vpop.f32.mrf.mxu1 }
 0x1be   :  { %v335_v38 = vpop.f32.mrf.mxu2 }
 0x1bf   :  { %v336_v39 = vadd.f32 %v488_v37, %v335_v38 }
 0x1c1   :  { %339 = vst [vmem:[#allocation10] sm:$0xff] %v336_v39 }
 0x1c2   :  { %350 = dma.vmem_to_hbm [thread:$0]  %s346_s28, 128, %s348_s9, [#allocation4]  }
 0x1c6   :  { %v337_v40 = vpop.f32.mrf.mxu2 }
 0x1c7   :  { %615 = dma.done.wait [#allocation4], 128  }
 0x1c8   :  { %616 = vsyncadd [#allocation4], 4294967168 }
 0x1c9   :  { %355 = vsyncpa [#allocation3], 1 }
 0x1ca   :  { %356 = vsyncpa [#allocation6], 1 }
 0x1cb   :  { %357 = vsyncpa [#allocation9], 1 }
 0x1cc   :  { %358 = vsyncpa [#allocation4], 1 }

</bundles_post_ra>
